<compile_context>
chip_gen: v7x
topology: tpu7x:2x2x1
jax: 0.10.0
libtpu: 0.0.40
codegen_flags: <defaults>
</compile_context>

<pallas_src>
import functools

import numpy as np
import jax
import jax.numpy as jnp
from jax import lax
from jax.experimental import pallas as pl
from jax.experimental.pallas import tpu as pltpu


def _round_up(n, m):
    return ((n + m - 1) // m) * m


def _gt_mlp_kernel(h_ref, wh_ref, pack_ref, pred_ref, *,
                   n_pad, n_events, t_total, t_in):
    # ---- unpack the parameter slab (all static slices of one loaded tile) ----
    P = pack_ref[...]                                   # (n_pad + 8, 32) f32
    r = n_pad
    scat = P[0:n_pad, 0:t_total]                        # (n_pad, 15) event->bucket weights
    x_row = P[r:r + 1, 0:t_total]                       # (1, 15) observed series, 0-padded
    w1 = P[r + 1:r + 8, 0:t_total]                      # (7, 15)  MLPReadout layer 1
    b1c = P[r + 1:r + 8, t_total:t_total + 1]           # (7, 1)
    w2t = P[r + 1:r + 8, 16:19]                         # (7, 3)   layer 2 (transposed)
    b2r = P[r:r + 1, 16:19]                             # (1, 3)
    w3r = P[r:r + 1, 20:23]                             # (1, 3)   layer 3
    b3 = P[r:r + 1, 23:24]                              # (1, 1)
    b_h = P[r:r + 1, 24:25]                             # embedding_h bias
    w_x = P[r:r + 1, 25:26]                             # fn_embedding_xh weight on x
    w_ei = P[r:r + 1, 26:27]                            # fn_embedding_xh weight on influence
    b_xh = P[r:r + 1, 27:28]                            # fn_embedding_xh bias

    # embedding_h: Linear(768, 1) as a VPU broadcast-multiply + lane reduction
    # (exact f32, no MXU fill/drain).
    h_emb = jnp.sum(h_ref[...] * wh_ref[...], axis=1, keepdims=True) + b_h  # (n_pad, 1)
    # Padded rows evaluate to b_h; the scatter rows for them are exactly zero,
    # but mask explicitly for robustness.
    ev_idx = lax.broadcasted_iota(jnp.int32, (n_pad, 1), 0)
    h_emb = jnp.where(ev_idx < n_events, h_emb, 0.0)

    # event influence: ei[t] = sum_n scat[n, t] * h_emb[n]  (sublane reduction)
    ei = jnp.sum(scat * h_emb, axis=0, keepdims=True)                       # (1, 15)

    # fn_embedding_xh on the observed buckets, raw influence on the rest.
    enhanced = w_x * x_row + w_ei * ei + b_xh                               # (1, 15)
    t_idx = lax.broadcasted_iota(jnp.int32, ei.shape, 1)
    final = jnp.where(t_idx < t_in, enhanced, ei)                           # (1, 15)

    # MLPReadout(15 -> 7 -> 3 -> 1) on the VPU/XLU, alternating row/column
    # orientation so no transposes are needed.
    y1 = jnp.maximum(jnp.sum(w1 * final, axis=1, keepdims=True) + b1c, 0.0)  # (7, 1)
    y2 = jnp.maximum(jnp.sum(w2t * y1, axis=0, keepdims=True) + b2r, 0.0)    # (1, 3)
    y3 = jnp.sum(w3r * y2, axis=1, keepdims=True) + b3                       # (1, 1)
    pred_ref[...] = y3


def build_scatter(event_dates, start_bucket, end_bucket, k, time_gap):
    """Host-side replica of the torch event-influence loop (uses .item()).

    Faithful to the torch code: the loop `break`s (not continues) when an
    event's influence span exceeds end_bucket, so event_dates is assumed to be
    sorted ascending.
    """
    span = int(1.0 / k)
    t_total = end_bucket - start_bucket + 1
    n = len(event_dates)
    s = np.zeros((n, t_total), np.float32)
    for idx in range(n):
        eb = (int(event_dates[idx]) - 1) // time_gap + 1   # get_time_bucket
        if eb + span - 1 < start_bucket:
            continue
        if eb + span - 1 > end_bucket:
            break
        for d in range(span):
            s[idx, eb + d - start_bucket] += (1.0 - k * d)
    return s


def gt_mlp_forward(params, h, e, x, event_dates, start_bucket, end_bucket,
                   k=0.25, time_gap=7):
    h = jnp.asarray(h, jnp.float32)
    e = jnp.asarray(e, jnp.float32)
    x_np = np.asarray(x, np.float32)

    n_events, feat = h.shape
    t_total = end_bucket - start_bucket + 1
    t_in = x_np.shape[0]
    assert t_total == 15, "MLPReadout(15, 1) requires end_bucket-start_bucket+1 == 15"
    assert t_in <= t_total

    n_pad = _round_up(max(n_events, 1), 8)

    p_np = {name: np.asarray(v, np.float32) for name, v in params.items()}
    scat = build_scatter(np.asarray(event_dates), start_bucket, end_bucket,
                         k, time_gap)

    # ---- one small parameter/scatter slab (n_pad + 8, 32) ----
    r = n_pad
    pack = np.zeros((n_pad + 8, 32), np.float32)
    pack[0:n_events, 0:t_total] = scat                 # event -> bucket weights
    pack[r, 0:t_in] = x_np                             # observed series (row)
    pack[r + 1:r + 8, 0:15] = p_np["mlp_w1"]           # (7, 15)
    pack[r + 1:r + 8, 15] = p_np["mlp_b1"]             # (7,)
    pack[r + 1:r + 8, 16:19] = p_np["mlp_w2"].T        # (7, 3)
    pack[r, 16:19] = p_np["mlp_b2"]                    # (3,)
    pack[r, 20:23] = p_np["mlp_w3"][0]                 # (3,)
    pack[r, 23] = p_np["mlp_b3"][0]
    pack[r, 24] = p_np["b_h"][0]
    pack[r, 25] = p_np["w_xh"][0, 0]
    pack[r, 26] = p_np["w_xh"][0, 1]
    pack[r, 27] = p_np["b_xh"][0]
    pack = jnp.asarray(pack)

    h_p = jnp.pad(h, ((0, n_pad - n_events), (0, 0)))  # (n_pad, 768)
    w_h_row = jnp.asarray(p_np["w_h"])                 # (1, 768)

    kernel = functools.partial(_gt_mlp_kernel, n_pad=n_pad, n_events=n_events,
                               t_total=t_total, t_in=t_in)

    flops = 2 * n_pad * feat + 2 * n_pad * t_total + 6 * t_total \
        + 2 * (15 * 7 + 7 * 3 + 3)
    bytes_accessed = 4 * (n_pad * feat + feat + (n_pad + 8) * 32 + 1)

    pred = pl.pallas_call(
        kernel,
        grid=(1,),
        in_specs=[
            pl.BlockSpec((n_pad, feat), lambda i: (0, 0)),       # node features
            pl.BlockSpec((1, feat), lambda i: (0, 0)),           # embedding_h weight
            pl.BlockSpec((n_pad + 8, 32), lambda i: (0, 0)),     # packed params/scatter/x
        ],
        out_specs=pl.BlockSpec((1, 1), lambda i: (0, 0)),
        out_shape=jax.ShapeDtypeStruct((1, 1), jnp.float32),
        compiler_params=pltpu.CompilerParams(
            dimension_semantics=("arbitrary",)),
        cost_estimate=pl.CostEstimate(flops=flops, transcendentals=0,
                                      bytes_accessed=bytes_accessed),
    )(h_p, w_h_row, pack)

    # embedding_e: Linear(1, 1) on every edge feature -- trivially fused by
    # XLA outside the kernel (unused downstream because the GT layer stack is
    # treated as identity).
    e_emb = e * params["w_e"][0, 0] + params["b_e"][0]            # (E, 1)

    return pred, e_emb


def init_params(key, hidden_dim=1):
    """Deterministic PyTorch-style (uniform +/- 1/sqrt(fan_in)) init."""
    def linear(k, fan_in, fan_out):
        k1, k2 = jax.random.split(k)
        bound = 1.0 / np.sqrt(fan_in)
        w = jax.random.uniform(k1, (fan_out, fan_in), jnp.float32, -bound, bound)
        b = jax.random.uniform(k2, (fan_out,), jnp.float32, -bound, bound)
        return w, b

    keys = jax.random.split(key, 6)
    p = {}
    p["w_h"], p["b_h"] = linear(keys[0], 768, hidden_dim)   # embedding_h
    p["w_e"], p["b_e"] = linear(keys[1], 1, hidden_dim)     # embedding_e
    p["w_xh"], p["b_xh"] = linear(keys[2], 2, 1)            # fn_embedding_xh
    p["mlp_w1"], p["mlp_b1"] = linear(keys[3], 15, 7)       # MLPReadout(15,1)
    p["mlp_w2"], p["mlp_b2"] = linear(keys[4], 7, 3)
    p["mlp_w3"], p["mlp_b3"] = linear(keys[5], 3, 1)
    # fn_embedding_h (Linear(out_dim, 1)) exists in __init__ but is never used
    # in forward, so it is omitted here.
    return p


def reference_forward(params, h, e, x, event_dates, start_bucket, end_bucket,
                      k=0.25, time_gap=7):
    p = {name: np.asarray(v, np.float32) for name, v in params.items()}
    h = np.asarray(h, np.float32)
    e = np.asarray(e, np.float32)
    x = np.asarray(x, np.float32)

    h_emb = h @ p["w_h"].T + p["b_h"]            # (N, 1) ; dropout = identity
    e_emb = e @ p["w_e"].T + p["b_e"]            # (E, 1)
    # TODO(synk): GraphTransformerLayer stack not provided -> identity here too.
    t_total = end_bucket - start_bucket + 1
    t_in = x.shape[0]
    span = int(1.0 / k)
    ei = np.zeros(t_total, np.float32)
    for idx in range(len(event_dates)):
        eb = (int(event_dates[idx]) - 1) // time_gap + 1
        if eb + span - 1 < start_bucket:
            continue
        if eb + span - 1 > end_bucket:
            break
        for d in range(span):
            ei[eb + d - start_bucket] += (1.0 - k * d) * h_emb[idx, 0]
    enhanced = (np.concatenate([x[:, None], ei[:t_in, None]], axis=1)
                @ p["w_xh"].T + p["b_xh"])
    final = np.concatenate([enhanced, ei[t_in:, None]], axis=0).squeeze()[None, :]
    y = np.maximum(final @ p["mlp_w1"].T + p["mlp_b1"], 0.0)
    y = np.maximum(y @ p["mlp_w2"].T + p["mlp_b2"], 0.0)
    y = y @ p["mlp_w3"].T + p["mlp_b3"]
    return y, e_emb


if __name__ == "__main__":
    key = jax.random.PRNGKey(0)
    pkey, hkey, ekey, xkey = jax.random.split(key, 4)
    params = init_params(pkey)

    n_events, n_edges = 6, 10
    start_bucket, end_bucket = 1, 15       # 15 buckets -> MLPReadout(15, 1)
    input_seq_len = 8
    h = jax.random.normal(hkey, (n_events, 768), jnp.float32)   # node features
    e = jax.random.normal(ekey, (n_edges, 1), jnp.float32)      # edge features
    x = jax.random.normal(xkey, (input_seq_len,), jnp.float32)  # time series
    event_dates = np.array([3, 10, 20, 30, 45, 60], np.int32)   # g.ndata['date']

    pred, e_emb = gt_mlp_forward(params, h, e, x, event_dates,
                                 start_bucket, end_bucket, k=0.25, time_gap=7)
    pred = jax.block_until_ready(pred)
    e_emb = jax.block_until_ready(e_emb)

    ref_pred, ref_e_emb = reference_forward(params, h, e, x, event_dates,
                                            start_bucket, end_bucket)
    np.testing.assert_allclose(np.asarray(pred), ref_pred, rtol=1e-4, atol=1e-4)
    np.testing.assert_allclose(np.asarray(e_emb), ref_e_emb, rtol=1e-4, atol=1e-4)
    print("KERNEL_OK")
</pallas_src>

<mosaic_0001>
module attributes {stable_mosaic.version = 11 : i64} {
  func.func @_gt_mlp_kernel(%arg0: i32, %arg1: memref<8x768xf32, #tpu.memory_space<vmem>>, %arg2: memref<1x768xf32, #tpu.memory_space<vmem>>, %arg3: memref<16x32xf32, #tpu.memory_space<vmem>>, %arg4: memref<1x1xf32, #tpu.memory_space<vmem>>) attributes {dimension_semantics = [#tpu.dimension_semantics<arbitrary>], iteration_bounds = array<i64: 1>, scalar_prefetch = 0 : i64, scratch_operands = 0 : i64, tpu.core_type = #tpu.core_type<tc>, window_params = [{pipeline_mode = #tpu.pipeline_mode<synchronous>, transform_indices = @transform_0, window_bounds = array<i64: 8, 768>}, {pipeline_mode = #tpu.pipeline_mode<synchronous>, transform_indices = @transform_1, window_bounds = array<i64: 1, 768>}, {pipeline_mode = #tpu.pipeline_mode<synchronous>, transform_indices = @transform_2, window_bounds = array<i64: 16, 32>}, {pipeline_mode = #tpu.pipeline_mode<synchronous>, transform_indices = @transform_3, window_bounds = array<i64: 1, 1>}]} {
    %c0 = arith.constant 0 : index
    %c0_0 = arith.constant 0 : index
    %0 = vector.load %arg3[%c0, %c0_0] : memref<16x32xf32, #tpu.memory_space<vmem>>, vector<16x32xf32>
    %1 = vector.extract_strided_slice %0 {offsets = [0, 0], sizes = [8, 15], strides = [1, 1]} : vector<16x32xf32> to vector<8x15xf32>
    %2 = vector.extract_strided_slice %0 {offsets = [8, 0], sizes = [1, 15], strides = [1, 1]} : vector<16x32xf32> to vector<1x15xf32>
    %3 = vector.extract_strided_slice %0 {offsets = [9, 0], sizes = [7, 15], strides = [1, 1]} : vector<16x32xf32> to vector<7x15xf32>
    %4 = vector.extract_strided_slice %0 {offsets = [9, 15], sizes = [7, 1], strides = [1, 1]} : vector<16x32xf32> to vector<7x1xf32>
    %5 = vector.extract_strided_slice %0 {offsets = [9, 16], sizes = [7, 3], strides = [1, 1]} : vector<16x32xf32> to vector<7x3xf32>
    %6 = vector.extract_strided_slice %0 {offsets = [8, 16], sizes = [1, 3], strides = [1, 1]} : vector<16x32xf32> to vector<1x3xf32>
    %7 = vector.extract_strided_slice %0 {offsets = [8, 20], sizes = [1, 3], strides = [1, 1]} : vector<16x32xf32> to vector<1x3xf32>
    %8 = vector.extract_strided_slice %0 {offsets = [8, 23], sizes = [1, 1], strides = [1, 1]} : vector<16x32xf32> to vector<1x1xf32>
    %9 = vector.extract_strided_slice %0 {offsets = [8, 24], sizes = [1, 1], strides = [1, 1]} : vector<16x32xf32> to vector<1x1xf32>
    %10 = vector.extract_strided_slice %0 {offsets = [8, 25], sizes = [1, 1], strides = [1, 1]} : vector<16x32xf32> to vector<1x1xf32>
    %11 = vector.extract_strided_slice %0 {offsets = [8, 26], sizes = [1, 1], strides = [1, 1]} : vector<16x32xf32> to vector<1x1xf32>
    %12 = vector.extract_strided_slice %0 {offsets = [8, 27], sizes = [1, 1], strides = [1, 1]} : vector<16x32xf32> to vector<1x1xf32>
    %c0_1 = arith.constant 0 : index
    %c0_2 = arith.constant 0 : index
    %13 = vector.load %arg1[%c0_1, %c0_2] : memref<8x768xf32, #tpu.memory_space<vmem>>, vector<8x768xf32>
    %c0_3 = arith.constant 0 : index
    %c0_4 = arith.constant 0 : index
    %14 = vector.load %arg2[%c0_3, %c0_4] : memref<1x768xf32, #tpu.memory_space<vmem>>, vector<1x768xf32>
    %15 = vector.broadcast %14 : vector<1x768xf32> to vector<8x768xf32>
    %16 = arith.mulf %13, %15 : vector<8x768xf32>
    %cst = arith.constant dense<0.000000e+00> : vector<8xf32>
    %17 = vector.multi_reduction <add>, %16, %cst [1] : vector<8x768xf32> to vector<8xf32>
    %18 = vector.shape_cast %17 : vector<8xf32> to vector<8x1xf32>
    %19 = vector.broadcast %9 : vector<1x1xf32> to vector<8x1xf32>
    %20 = arith.addf %18, %19 : vector<8x1xf32>
    %21 = tpu.iota {dimensions = array<i32: 0>} : vector<8x1xi32>
    %c6_i32 = arith.constant 6 : i32
    %22 = vector.broadcast %c6_i32 : i32 to vector<8x1xi32>
    %23 = arith.cmpi slt, %21, %22 : vector<8x1xi32>
    %cst_5 = arith.constant 0.000000e+00 : f32
    %24 = vector.broadcast %cst_5 : f32 to vector<8x1xf32>
    %25 = arith.select %23, %20, %24 : vector<8x1xi1>, vector<8x1xf32>
    %26 = vector.broadcast %25 : vector<8x1xf32> to vector<8x15xf32>
    %27 = arith.mulf %1, %26 : vector<8x15xf32>
    %cst_6 = arith.constant dense<0.000000e+00> : vector<15xf32>
    %28 = vector.multi_reduction <add>, %27, %cst_6 [0] : vector<8x15xf32> to vector<15xf32>
    %29 = vector.shape_cast %28 : vector<15xf32> to vector<1x15xf32>
    %30 = vector.broadcast %10 : vector<1x1xf32> to vector<1x15xf32>
    %31 = arith.mulf %30, %2 : vector<1x15xf32>
    %32 = vector.broadcast %11 : vector<1x1xf32> to vector<1x15xf32>
    %33 = arith.mulf %32, %29 : vector<1x15xf32>
    %34 = arith.addf %31, %33 : vector<1x15xf32>
    %35 = vector.broadcast %12 : vector<1x1xf32> to vector<1x15xf32>
    %36 = arith.addf %34, %35 : vector<1x15xf32>
    %37 = tpu.iota {dimensions = array<i32: 1>} : vector<1x15xi32>
    %c8_i32 = arith.constant 8 : i32
    %38 = vector.broadcast %c8_i32 : i32 to vector<1x15xi32>
    %39 = arith.cmpi slt, %37, %38 : vector<1x15xi32>
    %40 = arith.select %39, %36, %29 : vector<1x15xi1>, vector<1x15xf32>
    %41 = vector.broadcast %40 : vector<1x15xf32> to vector<7x15xf32>
    %42 = arith.mulf %3, %41 : vector<7x15xf32>
    %cst_7 = arith.constant dense<0.000000e+00> : vector<7xf32>
    %43 = vector.multi_reduction <add>, %42, %cst_7 [1] : vector<7x15xf32> to vector<7xf32>
    %44 = vector.shape_cast %43 : vector<7xf32> to vector<7x1xf32>
    %45 = arith.addf %44, %4 : vector<7x1xf32>
    %cst_8 = arith.constant 0.000000e+00 : f32
    %46 = vector.broadcast %cst_8 : f32 to vector<7x1xf32>
    %47 = arith.maximumf %45, %46 : vector<7x1xf32>
    %48 = vector.broadcast %47 : vector<7x1xf32> to vector<7x3xf32>
    %49 = arith.mulf %5, %48 : vector<7x3xf32>
    %cst_9 = arith.constant dense<0.000000e+00> : vector<3xf32>
    %50 = vector.multi_reduction <add>, %49, %cst_9 [0] : vector<7x3xf32> to vector<3xf32>
    %51 = vector.shape_cast %50 : vector<3xf32> to vector<1x3xf32>
    %52 = arith.addf %51, %6 : vector<1x3xf32>
    %cst_10 = arith.constant 0.000000e+00 : f32
    %53 = vector.broadcast %cst_10 : f32 to vector<1x3xf32>
    %54 = arith.maximumf %52, %53 : vector<1x3xf32>
    %55 = arith.mulf %7, %54 : vector<1x3xf32>
    %cst_11 = arith.constant dense<0.000000e+00> : vector<1xf32>
    %56 = vector.multi_reduction <add>, %55, %cst_11 [1] : vector<1x3xf32> to vector<1xf32>
    %57 = vector.shape_cast %56 : vector<1xf32> to vector<1x1xf32>
    %58 = arith.addf %57, %8 : vector<1x1xf32>
    %c0_12 = arith.constant 0 : index
    %c0_13 = arith.constant 0 : index
    %59 = vector.load %arg4[%c0_12, %c0_13] : memref<1x1xf32, #tpu.memory_space<vmem>>, vector<1x1xf32>
    tpu.vector_store %arg4[%c0_12, %c0_13], %58 {strides = array<i32>} : memref<1x1xf32, #tpu.memory_space<vmem>>, vector<1x1xf32>,
    return
  }
  func.func @transform_0(%arg0: i32) -> (i32, i32) {
    %c0_i32 = arith.constant 0 : i32
    %c0_i32_0 = arith.constant 0 : i32
    %c0_i32_1 = arith.constant 0 : i32
    return %c0_i32, %c0_i32_0 : i32, i32
  }
  func.func @transform_1(%arg0: i32) -> (i32, i32) {
    %c0_i32 = arith.constant 0 : i32
    %c0_i32_0 = arith.constant 0 : i32
    %c0_i32_1 = arith.constant 0 : i32
    return %c0_i32, %c0_i32_0 : i32, i32
  }
  func.func @transform_2(%arg0: i32) -> (i32, i32) {
    %c0_i32 = arith.constant 0 : i32
    %c0_i32_0 = arith.constant 0 : i32
    %c0_i32_1 = arith.constant 0 : i32
    return %c0_i32, %c0_i32_0 : i32, i32
  }
  func.func @transform_3(%arg0: i32) -> (i32, i32) {
    %c0_i32 = arith.constant 0 : i32
    %c0_i32_0 = arith.constant 0 : i32
    %c0_i32_1 = arith.constant 0 : i32
    return %c0_i32, %c0_i32_0 : i32, i32
  }
}

</mosaic_0001>

<bundles_post_ra>
// kernel: tpu_custom_call.1
= control target key start
LH: loop header
LB: loop body
LE: loop exit
PB: predicated region body
PF: predicated region fallthrough
CT: control target
= control target key end

     0   :  { %8 = vsyncpa [#allocation3], 0  ;;  %s430_s0 = inlined_call_operand.hbm [shape: f32[8,768], index: 0, kind: input, shape index: {}]   ;;  %s431_s1 = inlined_call_operand.hbm [shape: f32[1,768], index: 1, kind: input, shape index: {}]   ;;  %s432_s2 = inlined_call_operand.hbm [shape: f32[16,32], index: 2, kind: input, shape index: {}]   ;;  %s433_s3 = inlined_call_operand.hbm [shape: f32[1,1], index: 3, kind: output, shape index: {}]  }
   0x1   :  { %9 = vsyncpa [#allocation6], 0 }
   0x2   :  { %10 = vsyncpa [#allocation4], 0  ;;  %s328_s12 = smov [#allocation5]   ;;  %s329_s14 = smov [#allocation2]  }
   0x3   :  { %s27_s13 = sshll.u32 %s328_s12, 4  ;;  %s17_s15 = sshll.u32 %s329_s14, 4  ;;  %s28_s13 = int_to_ptr.vmem [resolvable:$true] %s27_s13  ;;  %s18_s15 = int_to_ptr.vmem [resolvable:$true] %s17_s15 }
   0x4   :  { %s234_s18 = scalar_lea.hbm %s431_s1, 96 }
   0x5   :  { %p235_p0 = scmp.ne.s32.totalorder %s431_s1, %s234_s18  ;;  %p238_p1 = scmp.lt.u32.totalorder %s234_s18, %s431_s1 }
   0x7   :  { %p240_p2 = pnand %p238_p1, %p235_p0 }
   0x9   :  { %243 = shalt.err (!%p240_p2)
}
   0xa   :  { %s244_s23 = scalar_lea.vmem %s28_s13, 96  ;;  %p249_p4 = scmp.lt.s32.totalorder %s28_s13, %s28_s13 }
   0xb   :  { %p245_p3 = scmp.ne.s32.totalorder %s28_s13, %s244_s23  ;;  %p250_p5 = scmp.lt.s32.totalorder %s244_s23, %s244_s23 }
   0xd   :  { %p251_p6 = por %p250_p5, %p249_p4 }
   0xf   :  { %p252_p7 = pnand %p251_p6, %p245_p3 }
  0x11   :  { %255 = shalt.err (!%p252_p7)
}
  0x12   :  { %30 = dma.hbm_to_vmem [thread:$0]  %s431_s1, 96, %s28_s13, [#allocation6]  }
  0x13   :  { %s256_s28 = scalar_lea.hbm %s430_s0, 768 }
  0x14   :  { %p257_p8 = scmp.ne.s32.totalorder %s430_s0, %s256_s28  ;;  %p260_p9 = scmp.lt.u32.totalorder %s256_s28, %s430_s0 }
  0x16   :  { %p262_p10 = pnand %p260_p9, %p257_p8 }
  0x18   :  { %265 = shalt.err (!%p262_p10)
}
  0x19   :  { %s266_s6 = scalar_lea.vmem %s18_s15, 768  ;;  %p271_p12 = scmp.lt.s32.totalorder %s18_s15, %s18_s15 }
  0x1a   :  { %p267_p11 = scmp.ne.s32.totalorder %s18_s15, %s266_s6  ;;  %p272_p13 = scmp.lt.s32.totalorder %s266_s6, %s266_s6 }
  0x1c   :  { %p273_p0 = por %p272_p13, %p271_p12 }
  0x1e   :  { %p274_p1 = pnand %p273_p0, %p267_p11 }
  0x20   :  { %277 = shalt.err (!%p274_p1)
}
  0x21   :  { %20 = dma.hbm_to_vmem [thread:$0]  %s430_s0, 768, %s18_s15, [#allocation3]  }
  0x22   :  { %s330_s8 = smov [#allocation7]   ;;  %s278_s12 = scalar_lea.hbm %s432_s2, 256 }
  0x23   :  { %s36_s9 = sshll.u32 %s330_s8, 4  ;;  %p279_p2 = scmp.ne.s32.totalorder %s432_s2, %s278_s12  ;;  %s37_s9 = int_to_ptr.vmem [resolvable:$true] %s36_s9 }
  0x24   :  { %p282_p3 = scmp.lt.u32.totalorder %s278_s12, %s432_s2 }
  0x26   :  { %p284_p4 = pnand %p282_p3, %p279_p2 }
  0x28   :  { %287 = shalt.err (!%p284_p4)
}
  0x29   :  { %s288_s18 = scalar_lea.vmem %s37_s9, 256  ;;  %p293_p6 = scmp.lt.s32.totalorder %s37_s9, %s37_s9 }
  0x2a   :  { %p289_p5 = scmp.ne.s32.totalorder %s37_s9, %s288_s18  ;;  %p294_p7 = scmp.lt.s32.totalorder %s288_s18, %s288_s18 }
  0x2c   :  { %p295_p8 = por %p294_p7, %p293_p6 }
  0x2e   :  { %p296_p9 = pnand %p295_p8, %p289_p5 }
  0x30   :  { %299 = shalt.err (!%p296_p9)
}
  0x31   :  { %s331_s0 = smov 128   ;;  %s332_s15 = smov 8  }
  0x32   :  { %42 = dma.hbm_to_vmem [thread:$0]  %s432_s2, 256, %s37_s9, [#allocation6], %s331_s0, %s331_s0, %s332_s15  }
  0x33   :  { %322 = dma.done.wait [#allocation3], 768  }
  0x34   :  { %323 = vsyncadd [#allocation3], 4294966528 }
  0x35   :  { %324 = dma.done.wait [#allocation6], 352  }
  0x36   :  { %325 = vsyncadd [#allocation6], 4294966944  ;;  %v62_v0 = vlaneseq  ;;  %v54_v6 = vld [vmem:[#allocation2] sm:$0xff]  ;;  %v55_v8 = vld [vmem:[#allocation2 + $0x8] sm:$0xff]  ;;  %v333_v32 = vmov 24   ;;  %v334_v34 = vmov 25  }
  0x37   :  { %v56_v9 = vld [vmem:[#allocation2 + $0x10] sm:$0xff]  ;;  %v57_v16 = vld [vmem:[#allocation2 + $0x18] sm:$0xff]  ;;  %v58_v21 = vld [vmem:[#allocation2 + $0x20] sm:$0xff]  ;;  %229 = vset.pattern.permute.xlu0 %v333_v32  ;;  %230 = vset.pattern.permute.xlu1 %v334_v34  ;;  %v335_v35 = vmov 26   ;;  %v336_v36 = vmov 27   ;;  %vm120_vm1 = vcmask 121856  }
  0x38   :  { %v63_v1 = vshrl.u32 %v62_v0, 7  ;;  %v60_v10 = vld [vmem:[#allocation5] sm:$0x3f]  ;;  %v59_v25 = vld [vmem:[#allocation2 + $0x28] sm:$0xff]  ;;  %v402_v33 = vld [vmem:[#allocation7 + $0x8] sm:$0xff]  ;;  %v146_v53 = vand.u32 127, %v62_v0 }
  0x39   :  { %130 = vperm.xlu1 %230, %v402_v33   ;;  %v52_v41 = vld [vmem:[#allocation7] sm:$0xff]  ;;  %vm154_vm3 = vcmask 121857   ;;  %v337_v63 = vmov 15   ;;  %vm169_vm4 = vcmask 153728   ;;  %s338_s2 = smov 4   ;;  %s339_s21 = smov 108  }
  0x3a   :  { %v399_v2 = vsub.s32 0, %v63_v1  ;;  %v68_v3 = vsub.s32 1, %v63_v1  ;;  %v72_v4 = vsub.s32 2, %v63_v1  ;;  %v76_v5 = vsub.s32 3, %v63_v1  ;;  %s340_s22 = smov 105   ;;  %s341_s23 = smov [#allocation8]  }
  0x3b   :  { %v80_v7 = vsub.s32 4, %v63_v1  ;;  %v84_v11 = vsub.s32 5, %v63_v1  ;;  %vm112_vm0 = vcmp.lt.s32.totalorder %v63_v1, 6  ;;  %vm147_vm2 = vcmp.lt.s32.totalorder %v146_v53, 8  ;;  %s205_s24 = sshll.u32 %s341_s23, 4  ;;  %s206_s24 = int_to_ptr.vmem [resolvable:$true] %s205_s24 }
  0x3c   :  { %v65_v12 = vrot.slane %v60_v10, %v399_v2  ;;  %v69_v13 = vrot.slane %v60_v10, %v68_v3  ;;  %v73_v14 = vrot.slane %v60_v10, %v72_v4  ;;  %v77_v15 = vrot.slane %v60_v10, %v76_v5  ;;  %s300_s25 = scalar_lea.vmem %s206_s24, 16  ;;  %s304_s26 = scalar_lea.vmem %s206_s24, 32 }
  0x3d   :  { %v81_v17 = vrot.slane %v60_v10, %v80_v7  ;;  %v85_v22 = vrot.slane %v60_v10, %v84_v11  ;;  %231 = vset.pattern.permute.xlu1 %v335_v35  ;;  %v108_v37 = vrot.slane %v402_v33, %v399_v2  ;;  %vm188_vm5 = vcmask 16384   ;;  %p301_p10 = scmp.ne.s32.totalorder %s206_s24, %s300_s25  ;;  %p305_p11 = scmp.lt.s32.totalorder %s206_s24, %s206_s24 }
  0x3e   :  { %v92_v18 = vmul.f32 %v65_v12, %v54_v6  ;;  %v93_v19 = vmul.f32 %v69_v13, %v55_v8  ;;  %v94_v20 = vmul.f32 %v73_v14, %v56_v9  ;;  %v95_v23 = vmul.f32 %v77_v15, %v57_v16  ;;  %135 = vperm.xlu1 %231, %v402_v33   ;;  %p306_p12 = scmp.lt.s32.totalorder %s304_s26, %s300_s25 }
  0x3f   :  { %v96_v26 = vmul.f32 %v81_v17, %v58_v21  ;;  %v97_v28 = vmul.f32 %v85_v22, %v59_v25  ;;  %vm197_vm6 = vcmask 0  }
  0x40   :  { %v98_v24 = vadd.f32 %v93_v19, %v92_v18  ;;  %p307_p13 = por %p306_p12, %p305_p11 }
  0x42   :  { %v99_v27 = vadd.f32 %v98_v24, %v94_v20  ;;  %232 = vset.pattern.permute.xlu1 %v336_v36  ;;  %p308_p0 = pnand %p307_p13, %p301_p10 }
  0x43   :  { %141 = vperm.xlu1 %232, %v402_v33  }
  0x44   :  { %v100_v29 = vadd.f32 %v99_v27, %v95_v23 }
  0x46   :  { %v101_v30 = vadd.f32 %v100_v29, %v96_v26 }
  0x48   :  { %v102_v31 = vadd.f32 %v101_v30, %v97_v28 }
  0x4a   :  { %103 = vadd.xlane.f32.xlu0 %v102_v31 }
  0xb8   :  { %v131_v46 = vpop.permute.xlu1 %130 }
  0xb9   :  { %v133_v54 = vmul.f32 %v131_v46, %v402_v33 }
  0xbd   :  { %v136_v50 = vpop.permute.xlu1 %135 }
  0xc2   :  { %v142_v56 = vpop.permute.xlu1 %141 }
  0xd7   :  { %v104_v38 = vpop.xlane.xlu0 %103 }
  0xd8   :  { %v109_v39 = vadd.f32 %v108_v37, %v104_v38 }
  0xda   :  { %v113_v40 = vsel %vm112_vm0, %v109_v39, 0.0 }
  0xdb   :  { %116 = vperm.xlu0 %229, %v113_v40  }
  0xdf   :  { %233 = vset.pattern.permute.xlu0 %v337_v63 }
 0x15a   :  { %v117_v42 = vpop.permute.xlu0 %116 }
 0x15b   :  { %v119_v43 = vmul.f32 %v117_v42, %v52_v41 }
 0x15d   :  { %v121_v44 = vsel %vm120_vm1, %v119_v43, 0.0 }
 0x15e   :  { %v122_v45 = vrot.slane %v121_v44, 4 }
 0x160   :  { %v123_v47 = vadd.f32 %v122_v45, %v121_v44 }
 0x162   :  { %v124_v48 = vrot.slane %v123_v47, 2 }
 0x164   :  { %v125_v49 = vadd.f32 %v124_v48, %v123_v47 }
 0x166   :  { %v126_v51 = vrot.slane %v125_v49, 1 }
 0x168   :  { %v127_v52 = vadd.f32 %v126_v51, %v125_v49 }
 0x16a   :  { %v138_v55 = vmul.f32 %v136_v50, %v127_v52 }
 0x16c   :  { %v139_v57 = vadd.f32 %v138_v55, %v133_v54 }
 0x16e   :  { %v144_v58 = vadd.f32 %v142_v56, %v139_v57 }
 0x170   :  { %v148_v59 = vsel %vm147_vm2, %v144_v58, %v127_v52 }
 0x171   :  { %v152_v60 = vrot.slane %v148_v59, %v399_v2 }
 0x173   :  { %v153_v61 = vmul.f32 %v152_v60, %v402_v33 }
 0x175   :  { %v155_v62 = vsel %vm154_vm3, %v153_v61, 0.0 }
 0x176   :  { %156 = vadd.xlane.f32.xlu1 %v155_v62 }
 0x203   :  { %v157_v1 = vpop.xlane.xlu1 %156 }
 0x204   :  { %v158_v0 = vadd.f32 %v157_v1, %v402_v33 }
 0x206   :  { %v159_v3 = vmax.f32 %v158_v0, 0.0 }
 0x208   :  { %162 = vperm.xlu0 %233, %v159_v3  }
 0x287   :  { %v163_v4 = vpop.permute.xlu0 %162 }
 0x288   :  { %v165_v5 = vmul.f32 %v163_v4, %v402_v33 }
 0x28a   :  { %v167_v6 = vrot.slane %v165_v5, 1 }
 0x28c   :  { %v170_v7 = vsel %vm169_vm4, %v167_v6, 0.0 }
 0x28d   :  { %v171_v8 = vrot.slane %v170_v7, 4 }
 0x28f   :  { %v172_v2 = vadd.f32 %v171_v8, %v170_v7 }
 0x291   :  { %v173_v9 = vrot.slane %v172_v2, 2 }
 0x293   :  { %v174_v10 = vadd.f32 %v173_v9, %v172_v2 }
 0x295   :  { %v175_v11 = vrot.slane %v174_v10, 1 }
 0x297   :  { %v176_v12 = vadd.f32 %v175_v11, %v174_v10 }
 0x299   :  { %v177_v13 = vadd.f32 %v176_v12, %v402_v33 }
 0x29b   :  { %v178_v14 = vmax.f32 %v177_v13, 0.0 }
 0x29d   :  { %180 = vrot.lane.b32.xlu1 %v178_v14, %s338_s2 }
 0x30f   :  { %v181_v15 = vpop.permute.xlu1 %180 }
 0x310   :  { %v183_v16 = vmul.f32 %v181_v15, %v402_v33 }
 0x312   :  { %185 = vrot.lane.b32.xlu0 %v183_v16, %s339_s21 }
 0x384   :  { %v186_v17 = vpop.permute.xlu0 %185 }
 0x385   :  { %v189_v18 = vsel %vm188_vm5, %v186_v17, 0.0 }
 0x386   :  { %190 = vadd.xlane.f32.xlu0 %v189_v18 }
 0x413   :  { %v191_v19 = vpop.xlane.xlu0 %190 }
 0x414   :  { %v192_v20 = vadd.f32 %v191_v19, %v402_v33 }
 0x416   :  { %194 = vrot.lane.b32.xlu1 %v192_v20, %s340_s22 }
 0x488   :  { %v195_v21 = vpop.permute.xlu1 %194 }
 0x489   :  { %198 = vst.msk [vmem:[#allocation8] sm:$0x1] %vm197_vm6, %v195_v21 }
 0x48a   :  { %311 = shalt.err (!%p308_p0)
}
 0x48b   :  { %s312_s29 = scalar_lea.hbm %s433_s3, 16 }
 0x48c   :  { %p313_p1 = scmp.ne.s32.totalorder %s433_s3, %s312_s29  ;;  %p316_p2 = scmp.lt.u32.totalorder %s312_s29, %s433_s3 }
 0x48e   :  { %p318_p3 = pnand %p316_p2, %p313_p1 }
 0x490   :  { %321 = shalt.err (!%p318_p3)
}
 0x491   :  { %208 = dma.vmem_to_hbm [thread:$0]  %s206_s24, 16, %s433_s3, [#allocation4]  }
 0x492   :  { %326 = dma.done.wait [#allocation4], 16  }
 0x493   :  { %327 = vsyncadd [#allocation4], 4294967280 }
 0x494   :  { %212 = vsyncpa [#allocation3], 1 }
 0x495   :  { %213 = vsyncpa [#allocation6], 1 }
 0x496   :  { %214 = vsyncpa [#allocation4], 1 }

</bundles_post_ra>
